<compile_context>
chip_gen: v6e
topology: v6e:2x2x1
jax: 0.10.0
libtpu: 0.0.40
codegen_flags: <defaults>
</compile_context>

<pallas_src>
import functools
import math

import jax
import jax.numpy as jnp
from jax.experimental import pallas as pl
from jax.experimental.pallas import tpu as pltpu


_SQRT1_2 = 0.7071067811865476


def _erf_poly(x):
    # Abramowitz & Stegun 7.1.26 (|err| < 1.5e-7): exp/mul/add/where plus an
    # EUP reciprocal, so it lowers cleanly in Mosaic and keeps VALU slots free.
    a1, a2, a3, a4, a5 = (0.254829592, -0.284496736, 1.421413741,
                          -1.453152027, 1.061405429)
    p = 0.3275911
    ax = jnp.abs(x)
    t = pl.reciprocal(1.0 + p * ax, approx=True)          # EUP, not VALU divide
    poly = ((((a5 * t + a4) * t + a3) * t + a2) * t + a1) * t
    y = 1.0 - poly * jnp.exp(-ax * ax)
    return jnp.where(x >= 0, y, -y)


def _gelu_exact(x):
    return 0.5 * x * (1.0 + _erf_poly(x * _SQRT1_2))


def _qffn_kernel(x_ref, w1_ref, b1_ref, mb_ref, w2_ref, b2_ref, o_ref):
    """Fused QuaternionLinear -> ModReLU -> QuaternionLinear on a token tile.

    x_ref : (TM, 4*E) f32   token tile, columns ordered [r | i | j | k]
    w1_ref: (4*E, 4*H) bf16 composed quaternion weight of fc1
    b1_ref: (1, 4*H) f32    fc1 bias, [r | i | j | k]
    mb_ref: (1, H) f32      ModReLU bias
    w2_ref: (4*H, 4*E) bf16 composed quaternion weight of fc2
    b2_ref: (1, 4*E) f32    fc2 bias
    o_ref : (TM, 4*E)
    """
    H = mb_ref.shape[1]

    # fc1: quaternion linear == one real block matmul. bf16 operands, f32 acc.
    x_bf16 = x_ref[...].astype(jnp.bfloat16)
    y = jnp.dot(x_bf16, w1_ref[...],
                preferred_element_type=jnp.float32) + b1_ref[...]

    # ModReLU (kept in f32): 2-norm over the 4 quaternion components of each
    # hidden unit, GELU(norm + bias) / (norm + 1e-6) applied to all components.
    yr = y[:, 0 * H:1 * H]
    yi = y[:, 1 * H:2 * H]
    yj = y[:, 2 * H:3 * H]
    yk = y[:, 3 * H:4 * H]
    norm = jnp.sqrt(yr * yr + yi * yi + yj * yj + yk * yk)
    scale = _gelu_exact(norm + mb_ref[...]) * pl.reciprocal(norm + 1e-6,
                                                            approx=True)
    # Quadrant-wise multiply + single bf16 concatenate (no (TM,4H) f32 scale4
    # temporary), producing fc2's bf16 LHS directly.
    ys = jnp.concatenate([(yr * scale).astype(jnp.bfloat16),
                          (yi * scale).astype(jnp.bfloat16),
                          (yj * scale).astype(jnp.bfloat16),
                          (yk * scale).astype(jnp.bfloat16)], axis=-1)

    # fc2: second quaternion linear, again a single MXU matmul (bf16 -> f32).
    z = jnp.dot(ys, w2_ref[...],
                preferred_element_type=jnp.float32) + b2_ref[...]
    o_ref[...] = z.astype(o_ref.dtype)


def _compose_quat_weight(wr, wi, wj, wk):
    """Four (out, in) quaternion weights -> (4*in, 4*out) real block matrix M
    such that [r|i|j|k] @ M == [r_out|i_out|j_out|k_out] of QuaternionLinear."""
    wrT, wiT, wjT, wkT = wr.T, wi.T, wj.T, wk.T
    row_r = jnp.concatenate([ wrT,  wiT,  wjT,  wkT], axis=1)
    row_i = jnp.concatenate([-wiT,  wrT, -wkT,  wjT], axis=1)
    row_j = jnp.concatenate([-wjT,  wkT,  wrT, -wiT], axis=1)
    row_k = jnp.concatenate([-wkT, -wjT,  wiT,  wrT], axis=1)
    return jnp.concatenate([row_r, row_i, row_j, row_k], axis=0)


def _round_up(n, m):
    return (n + m - 1) // m * m


def _vmem_limit_bytes():
    # Generation-aware: ~25% headroom for compiler scratch / pipelined buffers.
    # (v7x has only 64 MiB of physical VMEM per TensorCore.)
    try:
        cap = int(pltpu.get_tpu_info().vmem_capacity_bytes)
    except Exception:
        cap = 64 * 1024 * 1024
    return min(int(cap * 3 // 4), 96 * 1024 * 1024)


def prepare_qffn_params(params, *, matmul_dtype=jnp.bfloat16):
    """Compose quaternion weights/biases ONCE (they are parameters, not
    activations) and cast the matmul operands to bf16 for the MXU."""
    w1r, w1i, w1j, w1k, b1 = params["fc1"]
    w2r, w2i, w2j, w2k, b2 = params["fc2"]
    H, E = w1r.shape
    W1 = _compose_quat_weight(w1r, w1i, w1j, w1k).astype(matmul_dtype)  # (4E,4H)
    W2 = _compose_quat_weight(w2r, w2i, w2j, w2k).astype(matmul_dtype)  # (4H,4E)
    B1 = b1.T.reshape(1, 4 * H).astype(jnp.float32)                     # [r|i|j|k]
    B2 = b2.T.reshape(1, 4 * E).astype(jnp.float32)
    MB = params["modrelu_bias"].reshape(1, H).astype(jnp.float32)
    return {"W1": W1, "B1": B1, "MB": MB, "W2": W2, "B2": B2}


@functools.partial(jax.jit, static_argnames=("tile_m", "interpret"))
def quaternion_feed_forward(x, composed, *, tile_m=256, interpret=False):
    """x: (B, S, E, 4) float32 -> (B, S, E, 4), matching the PyTorch module."""
    B, S, E, four = x.shape
    assert four == 4
    W1, B1, MB, W2, B2 = (composed["W1"], composed["B1"], composed["MB"],
                          composed["W2"], composed["B2"])
    H = MB.shape[1]

    # Flatten tokens; de-interleave the quaternion axis ONCE at the boundary
    # into a lane-dense (N, 4E) slab.
    N = B * S
    x2 = jnp.moveaxis(x.reshape(N, E, 4), -1, -2).reshape(N, 4 * E)

    TM = min(tile_m, _round_up(N, 8))
    # v7x has 2 TensorCores: give the "parallel" token axis >= 2 steps when
    # possible so short sequences still use both cores.
    if _round_up(N, TM) // TM < 2 and TM > 8:
        TM = _round_up(-(-N // 2), 8)
    N_pad = _round_up(N, TM)
    if N_pad != N:
        x2 = jnp.pad(x2, ((0, N_pad - N), (0, 0)))
    steps = N_pad // TM

    # Resident operands never change across grid steps -> single VMEM buffer.
    resident = dict(pipeline_mode=pl.Buffered(1))
    # Token tile: deepen the pipeline when the grid is long enough.
    token_mode = dict(pipeline_mode=pl.Buffered(min(3, max(steps, 1))))

    out = pl.pallas_call(
        _qffn_kernel,
        out_shape=jax.ShapeDtypeStruct((N_pad, 4 * E), x.dtype),
        grid=(steps,),
        in_specs=[
            pl.BlockSpec((TM, 4 * E), lambda i: (i, 0), **token_mode),   # tokens
            pl.BlockSpec((4 * E, 4 * H), lambda i: (0, 0), **resident),  # W1
            pl.BlockSpec((1, 4 * H), lambda i: (0, 0), **resident),      # b1
            pl.BlockSpec((1, H), lambda i: (0, 0), **resident),          # modrelu b
            pl.BlockSpec((4 * H, 4 * E), lambda i: (0, 0), **resident),  # W2
            pl.BlockSpec((1, 4 * E), lambda i: (0, 0), **resident),      # b2
        ],
        out_specs=pl.BlockSpec((TM, 4 * E), lambda i: (i, 0)),
        compiler_params=pltpu.CompilerParams(
            dimension_semantics=("parallel",),
            vmem_limit_bytes=_vmem_limit_bytes()),
        interpret=interpret,
    )(x2, W1, B1, MB, W2, B2)

    out = out[:N].reshape(N, 4, E)
    return jnp.moveaxis(out, -2, -1).reshape(B, S, E, 4)
    # TODO(synk): for production E/H where bf16 W1+W2 still exceed v7x VMEM,
    # add an "arbitrary" grid axis tiling the hidden dim with a f32 accumulator.


def _reference(x, params):
    """Pure-JAX f32 reference mirroring the PyTorch module exactly."""
    hi = jax.lax.Precision.HIGHEST

    def qlinear(v, wr, wi, wj, wk, b):
        r, i, j, k = v[..., 0], v[..., 1], v[..., 2], v[..., 3]
        lin = lambda a, w: jnp.einsum("...e,he->...h", a, w, precision=hi)
        r_out = lin(r, wr) - lin(i, wi) - lin(j, wj) - lin(k, wk)
        i_out = lin(r, wi) + lin(i, wr) + lin(j, wk) - lin(k, wj)
        j_out = lin(r, wj) - lin(i, wk) + lin(j, wr) + lin(k, wi)
        k_out = lin(r, wk) + lin(i, wj) - lin(j, wi) + lin(k, wr)
        return jnp.stack([r_out, i_out, j_out, k_out], axis=-1) + b[None, None]

    def modrelu(v, bias):
        norm = jnp.sqrt(jnp.sum(v * v, axis=-1))
        g = norm + bias[None, None]
        scale = 0.5 * g * (1.0 + jax.lax.erf(g * _SQRT1_2))  # exact GELU
        scale = scale / (norm + 1e-6)
        return v * scale[..., None]

    h = qlinear(x, *params["fc1"])
    h = modrelu(h, params["modrelu_bias"])
    return qlinear(h, *params["fc2"])


if __name__ == "__main__":
    B, S, E, H = 2, 8, 32, 64
    key = jax.random.PRNGKey(0)
    ks = jax.random.split(key, 12)

    def xavier(k, shape):
        fan_out, fan_in = shape
        limit = math.sqrt(6.0 / (fan_in + fan_out))
        return jax.random.uniform(k, shape, jnp.float32, -limit, limit)

    params = {
        "fc1": (xavier(ks[0], (H, E)), xavier(ks[1], (H, E)),
                xavier(ks[2], (H, E)), xavier(ks[3], (H, E)),
                0.1 * jax.random.normal(ks[4], (H, 4), jnp.float32)),
        "modrelu_bias": 0.1 * jax.random.normal(ks[5], (H,), jnp.float32),
        "fc2": (xavier(ks[6], (E, H)), xavier(ks[7], (E, H)),
                xavier(ks[8], (E, H)), xavier(ks[9], (E, H)),
                0.1 * jax.random.normal(ks[10], (E, 4), jnp.float32)),
    }
    x = jax.random.normal(ks[11], (B, S, E, 4), jnp.float32)

    composed = prepare_qffn_params(params)          # compose weights ONCE
    out = quaternion_feed_forward(x, composed)
    out = jax.block_until_ready(out)

    ref = _reference(x, params)
    assert out.shape == (B, S, E, 4)
    assert bool(jnp.all(jnp.isfinite(out)))
    # bf16 MXU operands with f32 accumulation -> validate with a relative
    # Frobenius-norm bound appropriate for bf16 weights/activations.
    rel_err = float(jnp.linalg.norm(out - ref) / jnp.linalg.norm(ref))
    assert rel_err < 1e-2, rel_err

    print("KERNEL_OK")
</pallas_src>

<mosaic_0001>
module attributes {stable_mosaic.version = 11 : i64} {
  func.func @_qffn_kernel(%arg0: i32, %arg1: memref<8x128xf32, #tpu.memory_space<vmem>>, %arg2: memref<128x256xbf16, #tpu.memory_space<vmem>>, %arg3: memref<1x256xf32, #tpu.memory_space<vmem>>, %arg4: memref<1x64xf32, #tpu.memory_space<vmem>>, %arg5: memref<256x128xbf16, #tpu.memory_space<vmem>>, %arg6: memref<1x128xf32, #tpu.memory_space<vmem>>, %arg7: memref<8x128xf32, #tpu.memory_space<vmem>>) attributes {dimension_semantics = [#tpu.dimension_semantics<parallel>], iteration_bounds = array<i64: 2>, scalar_prefetch = 0 : i64, scratch_operands = 0 : i64, tpu.core_type = #tpu.core_type<tc>, window_params = [{pipeline_mode = #tpu.pipeline_mode<double_buffered>, transform_indices = @transform_0, window_bounds = array<i64: 8, 128>}, {pipeline_mode = #tpu.pipeline_mode<synchronous>, transform_indices = @transform_1, window_bounds = array<i64: 128, 256>}, {pipeline_mode = #tpu.pipeline_mode<synchronous>, transform_indices = @transform_2, window_bounds = array<i64: 1, 256>}, {pipeline_mode = #tpu.pipeline_mode<synchronous>, transform_indices = @transform_3, window_bounds = array<i64: 1, 64>}, {pipeline_mode = #tpu.pipeline_mode<synchronous>, transform_indices = @transform_4, window_bounds = array<i64: 256, 128>}, {pipeline_mode = #tpu.pipeline_mode<synchronous>, transform_indices = @transform_5, window_bounds = array<i64: 1, 128>}, {transform_indices = @transform_6, window_bounds = array<i64: 8, 128>}]} {
    %c0 = arith.constant 0 : index
    %c0_0 = arith.constant 0 : index
    %0 = vector.load %arg1[%c0, %c0_0] : memref<8x128xf32, #tpu.memory_space<vmem>>, vector<8x128xf32>
    %1 = arith.truncf %0 : vector<8x128xf32> to vector<8x128xbf16>
    %c0_1 = arith.constant 0 : index
    %c0_2 = arith.constant 0 : index
    %2 = vector.load %arg2[%c0_1, %c0_2] : memref<128x256xbf16, #tpu.memory_space<vmem>>, vector<128x256xbf16>
    %cst = arith.constant dense<0.000000e+00> : vector<8x256xf32>
    %3 = tpu.matmul %1, %2, %cst {dimension_numbers = #tpu.dot_dimension_numbers<[1], [0], [0], [1], [0, 0, 1, 1], [], []>} : vector<8x128xbf16>, vector<128x256xbf16>, vector<8x256xf32> -> vector<8x256xf32>
    %c0_3 = arith.constant 0 : index
    %c0_4 = arith.constant 0 : index
    %4 = vector.load %arg3[%c0_3, %c0_4] : memref<1x256xf32, #tpu.memory_space<vmem>>, vector<1x256xf32>
    %5 = vector.broadcast %4 : vector<1x256xf32> to vector<8x256xf32>
    %6 = arith.addf %3, %5 : vector<8x256xf32>
    %7 = vector.extract_strided_slice %6 {offsets = [0, 0], sizes = [8, 64], strides = [1, 1]} : vector<8x256xf32> to vector<8x64xf32>
    %8 = vector.extract_strided_slice %6 {offsets = [0, 64], sizes = [8, 64], strides = [1, 1]} : vector<8x256xf32> to vector<8x64xf32>
    %9 = vector.extract_strided_slice %6 {offsets = [0, 128], sizes = [8, 64], strides = [1, 1]} : vector<8x256xf32> to vector<8x64xf32>
    %10 = vector.extract_strided_slice %6 {offsets = [0, 192], sizes = [8, 64], strides = [1, 1]} : vector<8x256xf32> to vector<8x64xf32>
    %11 = arith.mulf %7, %7 : vector<8x64xf32>
    %12 = arith.mulf %8, %8 : vector<8x64xf32>
    %13 = arith.addf %11, %12 : vector<8x64xf32>
    %14 = arith.mulf %9, %9 : vector<8x64xf32>
    %15 = arith.addf %13, %14 : vector<8x64xf32>
    %16 = arith.mulf %10, %10 : vector<8x64xf32>
    %17 = arith.addf %15, %16 : vector<8x64xf32>
    %18 = math.sqrt %17 : vector<8x64xf32>
    %c0_5 = arith.constant 0 : index
    %c0_6 = arith.constant 0 : index
    %19 = vector.load %arg4[%c0_5, %c0_6] : memref<1x64xf32, #tpu.memory_space<vmem>>, vector<1x64xf32>
    %20 = vector.broadcast %19 : vector<1x64xf32> to vector<8x64xf32>
    %21 = arith.addf %18, %20 : vector<8x64xf32>
    %cst_7 = arith.constant 5.000000e-01 : f32
    %22 = vector.broadcast %cst_7 : f32 to vector<8x64xf32>
    %23 = arith.mulf %22, %21 : vector<8x64xf32>
    %cst_8 = arith.constant 0.707106769 : f32
    %24 = vector.broadcast %cst_8 : f32 to vector<8x64xf32>
    %25 = arith.mulf %21, %24 : vector<8x64xf32>
    %26 = math.absf %25 : vector<8x64xf32>
    %cst_9 = arith.constant 0.327591091 : f32
    %27 = vector.broadcast %cst_9 : f32 to vector<8x64xf32>
    %28 = arith.mulf %27, %26 : vector<8x64xf32>
    %cst_10 = arith.constant 1.000000e+00 : f32
    %29 = vector.broadcast %cst_10 : f32 to vector<8x64xf32>
    %30 = arith.addf %29, %28 : vector<8x64xf32>
    %31 = tpu.reciprocal %30 {approx = true} : vector<8x64xf32> -> vector<8x64xf32>
    %cst_11 = arith.constant 1.06140542 : f32
    %32 = vector.broadcast %cst_11 : f32 to vector<8x64xf32>
    %33 = arith.mulf %32, %31 : vector<8x64xf32>
    %cst_12 = arith.constant -1.45315206 : f32
    %34 = vector.broadcast %cst_12 : f32 to vector<8x64xf32>
    %35 = arith.addf %33, %34 : vector<8x64xf32>
    %36 = arith.mulf %35, %31 : vector<8x64xf32>
    %cst_13 = arith.constant 1.42141378 : f32
    %37 = vector.broadcast %cst_13 : f32 to vector<8x64xf32>
    %38 = arith.addf %36, %37 : vector<8x64xf32>
    %39 = arith.mulf %38, %31 : vector<8x64xf32>
    %cst_14 = arith.constant -0.284496725 : f32
    %40 = vector.broadcast %cst_14 : f32 to vector<8x64xf32>
    %41 = arith.addf %39, %40 : vector<8x64xf32>
    %42 = arith.mulf %41, %31 : vector<8x64xf32>
    %cst_15 = arith.constant 0.254829586 : f32
    %43 = vector.broadcast %cst_15 : f32 to vector<8x64xf32>
    %44 = arith.addf %42, %43 : vector<8x64xf32>
    %45 = arith.mulf %44, %31 : vector<8x64xf32>
    %cst_16 = arith.constant 0.000000e+00 : f32
    %46 = vector.broadcast %cst_16 : f32 to vector<8x64xf32>
    %47 = arith.subf %46, %26 : vector<8x64xf32>
    %48 = arith.mulf %47, %26 : vector<8x64xf32>
    %49 = math.exp %48 : vector<8x64xf32>
    %50 = arith.mulf %45, %49 : vector<8x64xf32>
    %cst_17 = arith.constant 1.000000e+00 : f32
    %51 = vector.broadcast %cst_17 : f32 to vector<8x64xf32>
    %52 = arith.subf %51, %50 : vector<8x64xf32>
    %cst_18 = arith.constant 0.000000e+00 : f32
    %53 = vector.broadcast %cst_18 : f32 to vector<8x64xf32>
    %54 = arith.cmpf oge, %25, %53 : vector<8x64xf32>
    %cst_19 = arith.constant 0.000000e+00 : f32
    %55 = vector.broadcast %cst_19 : f32 to vector<8x64xf32>
    %56 = arith.subf %55, %52 : vector<8x64xf32>
    %57 = arith.select %54, %52, %56 : vector<8x64xi1>, vector<8x64xf32>
    %cst_20 = arith.constant 1.000000e+00 : f32
    %58 = vector.broadcast %cst_20 : f32 to vector<8x64xf32>
    %59 = arith.addf %58, %57 : vector<8x64xf32>
    %60 = arith.mulf %23, %59 : vector<8x64xf32>
    %cst_21 = arith.constant 9.99999997E-7 : f32
    %61 = vector.broadcast %cst_21 : f32 to vector<8x64xf32>
    %62 = arith.addf %18, %61 : vector<8x64xf32>
    %63 = tpu.reciprocal %62 {approx = true} : vector<8x64xf32> -> vector<8x64xf32>
    %64 = arith.mulf %60, %63 : vector<8x64xf32>
    %65 = arith.mulf %7, %64 : vector<8x64xf32>
    %66 = arith.truncf %65 : vector<8x64xf32> to vector<8x64xbf16>
    %67 = arith.mulf %8, %64 : vector<8x64xf32>
    %68 = arith.truncf %67 : vector<8x64xf32> to vector<8x64xbf16>
    %69 = arith.mulf %9, %64 : vector<8x64xf32>
    %70 = arith.truncf %69 : vector<8x64xf32> to vector<8x64xbf16>
    %71 = arith.mulf %10, %64 : vector<8x64xf32>
    %72 = arith.truncf %71 : vector<8x64xf32> to vector<8x64xbf16>
    %73 = tpu.concatenate %66, %68, %70, %72 in 1 : vector<8x64xbf16>, vector<8x64xbf16>, vector<8x64xbf16>, vector<8x64xbf16> -> vector<8x256xbf16>
    %c0_22 = arith.constant 0 : index
    %c0_23 = arith.constant 0 : index
    %74 = vector.load %arg5[%c0_22, %c0_23] : memref<256x128xbf16, #tpu.memory_space<vmem>>, vector<256x128xbf16>
    %cst_24 = arith.constant dense<0.000000e+00> : vector<8x128xf32>
    %75 = tpu.matmul %73, %74, %cst_24 {dimension_numbers = #tpu.dot_dimension_numbers<[1], [0], [0], [1], [0, 0, 1, 1], [], []>} : vector<8x256xbf16>, vector<256x128xbf16>, vector<8x128xf32> -> vector<8x128xf32>
    %c0_25 = arith.constant 0 : index
    %c0_26 = arith.constant 0 : index
    %76 = vector.load %arg6[%c0_25, %c0_26] : memref<1x128xf32, #tpu.memory_space<vmem>>, vector<1x128xf32>
    %77 = vector.broadcast %76 : vector<1x128xf32> to vector<8x128xf32>
    %78 = arith.addf %75, %77 : vector<8x128xf32>
    %c0_27 = arith.constant 0 : index
    %c0_28 = arith.constant 0 : index
    %79 = vector.load %arg7[%c0_27, %c0_28] : memref<8x128xf32, #tpu.memory_space<vmem>>, vector<8x128xf32>
    tpu.vector_store %arg7[%c0_27, %c0_28], %78 {strides = array<i32>} : memref<8x128xf32, #tpu.memory_space<vmem>>, vector<8x128xf32>,
    return
  }
  func.func @transform_0(%arg0: i32) -> (i32, i32) {
    %c0_i32 = arith.constant 0 : i32
    %c0_i32_0 = arith.constant 0 : i32
    return %arg0, %c0_i32 : i32, i32
  }
  func.func @transform_1(%arg0: i32) -> (i32, i32) {
    %c0_i32 = arith.constant 0 : i32
    %c0_i32_0 = arith.constant 0 : i32
    %c0_i32_1 = arith.constant 0 : i32
    return %c0_i32, %c0_i32_0 : i32, i32
  }
  func.func @transform_2(%arg0: i32) -> (i32, i32) {
    %c0_i32 = arith.constant 0 : i32
    %c0_i32_0 = arith.constant 0 : i32
    %c0_i32_1 = arith.constant 0 : i32
    return %c0_i32, %c0_i32_0 : i32, i32
  }
  func.func @transform_3(%arg0: i32) -> (i32, i32) {
    %c0_i32 = arith.constant 0 : i32
    %c0_i32_0 = arith.constant 0 : i32
    %c0_i32_1 = arith.constant 0 : i32
    return %c0_i32, %c0_i32_0 : i32, i32
  }
  func.func @transform_4(%arg0: i32) -> (i32, i32) {
    %c0_i32 = arith.constant 0 : i32
    %c0_i32_0 = arith.constant 0 : i32
    %c0_i32_1 = arith.constant 0 : i32
    return %c0_i32, %c0_i32_0 : i32, i32
  }
  func.func @transform_5(%arg0: i32) -> (i32, i32) {
    %c0_i32 = arith.constant 0 : i32
    %c0_i32_0 = arith.constant 0 : i32
    %c0_i32_1 = arith.constant 0 : i32
    return %c0_i32, %c0_i32_0 : i32, i32
  }
  func.func @transform_6(%arg0: i32) -> (i32, i32) {
    %c0_i32 = arith.constant 0 : i32
    %c0_i32_0 = arith.constant 0 : i32
    return %arg0, %c0_i32 : i32, i32
  }
}

</mosaic_0001>

<bundles_post_ra>
// kernel: quaternion_feed_forward.1
= control target key start
LH: loop header
LB: loop body
LE: loop exit
PB: predicated region body
PF: predicated region fallthrough
CT: control target
= control target key end

     0   :  { %11 = vsyncpa [#allocation3], 0  ;;  %s1114_s0 = inlined_call_operand.vmem [shape: f32[16,128], index: 0, kind: input, shape index: {}]   ;;  %s1115_s1 = inlined_call_operand.hbm [shape: bf16[128,256], index: 1, kind: input, shape index: {}]   ;;  %s1116_s2 = inlined_call_operand.vmem [shape: f32[1,256], index: 2, kind: input, shape index: {}]   ;;  %s1117_s3 = inlined_call_operand.vmem [shape: f32[1,64], index: 3, kind: input, shape index: {}]   ;;  %s1118_s4 = inlined_call_operand.hbm [shape: bf16[256,128], index: 4, kind: input, shape index: {}]   ;;  %s1119_s5 = inlined_call_operand.vmem [shape: f32[1,128], index: 5, kind: input, shape index: {}]   ;;  %s1120_s6 = inlined_call_operand.vmem [shape: f32[16,128], index: 6, kind: output, shape index: {}]  }
   0x1   :  { %12 = vsyncpa [#allocation5], 0  ;;  %s1021_s21 = smov 0  }
   0x2 LB: > { %s978_s22 = smov [#allocation2]   ;;  %s1027_s24 = sadd.s32 4294967295, %s976_s21   ;;  %s976_s21 = sphi %s1021_s21, %s18_s21  }
   0x3   : > { %s192_s23 = sshll.u32 %s978_s22, 4  ;;  %p760_p0 = scmp.ge.s32.totalorder %s976_s21, 1  ;;  %s193_s23 = int_to_ptr.vmem [resolvable:$true] %s192_s23 }
   0x4   : > { %p180_p1 = scmp.lt.s32.totalorder %s976_s21, 3  ;;  %p842_p3 = scmp.eq.s32.totalorder %s1027_s24, 0 }
   0x5   : > { %s979_s26 = smov [#allocation4]   ;;  %s921_s29 = scalar_lea.vmem %s193_s23, 2048 }
   0x6   : > { %p1031_p2 = pnand %p760_p0, %p180_p1  ;;  %s211_s27 = sshll.u32 %s979_s26, 4  ;;  %s212_s27 = int_to_ptr.vmem [resolvable:$true] %s211_s27 }
   0x7   : > { %p922_p7 = scmp.ne.s32.totalorder %s193_s23, %s921_s29  ;;  %p929_p10 = scmp.lt.s32.totalorder %s193_s23, %s193_s23 }
   0x8   : > { %p835_p4 = pneg %p1031_p2  ;;  %p930_p11 = scmp.lt.s32.totalorder %s921_s29, %s921_s29 }
   0xa   : > { %p1040_p5 = pnand %p842_p3, %p835_p4  ;;  %p931_p12 = por %p930_p11, %p929_p10 }
   0xc   : > { %p912_p6 = pneg %p1040_p5 }
   0xe   : > { %p924_p8 = pnand %p922_p7, %p912_p6 }
  0x10   : > { %p925_p9 = pneg %p924_p8 }
  0x12   : > { %p932_p13 = pnand %p931_p12, %p925_p9 }
  0x14   : > { %935 = shalt.err (!%p932_p13)
}
  0x15   : > { %s980_s30 = smov 128   ;;  %s981_s7 = smov 8  }
  0x16   : > { %838 = dma.hbm_to_vmem [thread:$0]  (!%p1040_p5), %s1115_s1, 2048, %s193_s23, [#allocation3], %s980_s30, %s980_s30, %s981_s7  }
  0x17   : > { %s947_s10 = scalar_lea.vmem %s212_s27, 2048  ;;  %p955_p7 = scmp.lt.s32.totalorder %s212_s27, %s212_s27 }
  0x18   : > { %p948_p0 = scmp.ne.s32.totalorder %s212_s27, %s947_s10  ;;  %p956_p8 = scmp.lt.s32.totalorder %s947_s10, %s947_s10 }
  0x1a   : > { %p950_p1 = pnand %p948_p0, %p912_p6  ;;  %p957_p10 = por %p956_p8, %p955_p7 }
  0x1c   : > { %p951_p4 = pneg %p950_p1 }
  0x1e   : > { %p958_p9 = pnand %p957_p10, %p951_p4 }
  0x20   : > { %961 = shalt.err (!%p958_p9)
}
  0x21   : > { %s982_s11 = smov 64   ;;  %s983_s12 = smov 4  }
  0x22   : > { %841 = dma.hbm_to_vmem [thread:$0]  (!%p1040_p5), %s1118_s4, 2048, %s212_s27, [#allocation5], %s982_s11, %s982_s11, %s983_s12  }
  0x23   : > { %237 = sbr.rel (%p1031_p2) target bundleno = 788 (0x314), region = 44 }
  0x28   : > { %967 = dma.done.wait (%p842_p3), [#allocation3], 2048  }
  0x29   : > { %969 = vsyncadd (%p842_p3), [#allocation3], 4294965248 }
  0x2a   : > { %971 = dma.done.wait (%p842_p3), [#allocation5], 2048  }
  0x2b   : > { %973 = vsyncadd (%p842_p3), [#allocation5], 4294965248  ;;  %v984_v0 = vmov 0   ;;  %v862_v1 = vld [vmem:[#allocation2 + $0x74] ss:$8 sps:$4 sm:$0xff]   ;;  %p269_p2 = scmp.lt.s32.totalorder %s1027_s24, 1  ;;  %v298_v19 = vlaneseq }
  0x2c   : > { %420 = vmatprep.mubr.bf16.mxu0 %v984_v0  ;;  %v864_v2 = vld [vmem:[#allocation2 + $0x70] ss:$8 sps:$4 sm:$0xff]   ;;  %388 = vmatprep.subr.bf16.mxu0 %v862_v1  ;;  %v865_v3 = vld [vmem:[#allocation2 + $0x64] ss:$8 sps:$4 sm:$0xff]   ;;  %v867_v4 = vld [vmem:[#allocation2 + $0x60] ss:$8 sps:$4 sm:$0xff]  }
  0x2d   : > { %389 = vmatpush1.bf16.msra.mxu0 %v864_v2  ;;  %v868_v5 = vld [vmem:[#allocation2 + $0x54] ss:$8 sps:$4 sm:$0xff]   ;;  %s1124_s24 = smov (!%p269_p2, %s1027_s24), 1  ;;  %v870_v6 = vld [vmem:[#allocation2 + $0x50] ss:$8 sps:$4 sm:$0xff]   ;;  %v299_v20 = vshrl.u32 %v298_v19, 7 }
  0x2e   : > { %390 = vmatprep.subr.bf16.mxu0 %v865_v3  ;;  %v871_v7 = vld [vmem:[#allocation2 + $0x44] ss:$8 sps:$4 sm:$0xff]   ;;  %v873_v8 = vld [vmem:[#allocation2 + $0x40] ss:$8 sps:$4 sm:$0xff]   ;;  %s767_s15 = sshll.u32 %s1124_s24, 3  ;;  %s985_s22 = smov 64  }
  0x2f   : > { %v874_v9 = vld [vmem:[#allocation2 + $0x34] ss:$8 sps:$4 sm:$0xff]   ;;  %v876_v10 = vld [vmem:[#allocation2 + $0x30] ss:$8 sps:$4 sm:$0xff]   ;;  %v877_v11 = vld [vmem:[#allocation2 + $0x24] ss:$8 sps:$4 sm:$0xff]   ;;  %s272_s18 = scalar_lea.vmem %s1114_s0, %s767_s15  ;;  %s276_s30 = scalar_lea.vmem %s1120_s6, %s767_s15 }
  0x30   : > { %v879_v12 = vld [vmem:[#allocation2 + $0x20] ss:$8 sps:$4 sm:$0xff]   ;;  %v880_v13 = vld [vmem:[#allocation2 + $0x14] ss:$8 sps:$4 sm:$0xff]   ;;  %v882_v14 = vld [vmem:[#allocation2 + $0x10] ss:$8 sps:$4 sm:$0xff]  }
  0x31   : > { %391 = vmatpush1.bf16.msra.mxu0 %v867_v4  ;;  %v883_v15 = vld [vmem:[#allocation2 + $0x4] ss:$8 sps:$4 sm:$0xff]   ;;  %v885_v16 = vld [vmem:[#allocation2] ss:$8 sps:$4 sm:$0xff]   ;;  %v300_v21 = vsub.s32 0, %v299_v20  ;;  %v304_v23 = vsub.s32 1, %v299_v20 }
  0x32   : > { %392 = vmatprep.subr.bf16.mxu0 %v868_v5  ;;  %v278_v17 = vld [vmem:[%s272_s18] sm:$0xff]  ;;  %v886_v34 = vld [vmem:[#allocation4 + $0x78] sm:$0xff]   ;;  %v888_v36 = vld [vmem:[#allocation4 + $0x70] sm:$0xff]   ;;  %vm498_vm3 = vcmask 523264  }
  0x33   : > { %v279_v18 = vpack.c.bf16 %v278_v17, %v278_v17  ;;  %v296_v22 = vld [vmem:[%s1116_s2] sm:$0x3]  ;;  %v887_v35 = vld [vmem:[#allocation4 + $0x38] sm:$0xff]   ;;  %805 = vmatprep.subr.bf16.mxu1 %v886_v34  ;;  %v889_v37 = vld [vmem:[#allocation4 + $0x30] sm:$0xff]  }
  0x34   : > { %v301_v24 = vrot.slane %v296_v22, %v300_v21  ;;  %v305_v25 = vrot.slane %v296_v22, %v304_v23  ;;  %806 = vmatpush3.bf16.msra.mxu1 %v887_v35  ;;  %v890_v38 = vld [vmem:[#allocation4 + $0x68] sm:$0xff]   ;;  %v892_v40 = vld [vmem:[#allocation4 + $0x60] sm:$0xff]   ;;  %v894_v42 = vld [vmem:[#allocation4 + $0x58] sm:$0xff]  }
  0x35   : > { %393 = vmatpush1.bf16.msra.mxu0 %v870_v6  ;;  %807 = vmatprep.subr.bf16.mxu1 %v888_v36  ;;  %v891_v39 = vld [vmem:[#allocation4 + $0x28] sm:$0xff]   ;;  %v893_v41 = vld [vmem:[#allocation4 + $0x20] sm:$0xff]   ;;  %v895_v43 = vld [vmem:[#allocation4 + $0x18] sm:$0xff]  }
  0x36   : > { %394 = vmatprep.subr.bf16.mxu0 %v871_v7  ;;  %v896_v44 = vld [vmem:[#allocation4 + $0x50] sm:$0xff]   ;;  %v898_v46 = vld [vmem:[#allocation4 + $0x48] sm:$0xff]   ;;  %v785_v56 = vld [vmem:[%s1117_s3] ss:$0 sm:$0xff] }
  0x37   : > { %v897_v45 = vld [vmem:[#allocation4 + $0x10] sm:$0xff]   ;;  %v899_v47 = vld [vmem:[#allocation4 + $0x8] sm:$0xff]   ;;  %v901_v17 = vld [vmem:[#allocation4] sm:$0xff]  }
  0x38   : > { %808 = vmatpush3.bf16.msra.mxu1 %v889_v37 }
  0x39   : > { %395 = vmatpush1.bf16.msra.mxu0 %v873_v8  ;;  %809 = vmatprep.subr.bf16.mxu1 %v890_v38 }
  0x3a   : > { %396 = vmatprep.subr.bf16.mxu0 %v874_v9 }
  0x3c   : > { %810 = vmatpush3.bf16.msra.mxu1 %v891_v39 }
  0x3d   : > { %397 = vmatpush1.bf16.msra.mxu0 %v876_v10  ;;  %811 = vmatprep.subr.bf16.mxu1 %v892_v40  ;;  %v786_v40 = vld [vmem:[%s1119_s5] ss:$0 sm:$0xff] }
  0x3e   : > { %398 = vmatprep.subr.bf16.mxu0 %v877_v11 }
  0x40   : > { %812 = vmatpush3.bf16.msra.mxu1 %v893_v41 }
  0x41   : > { %399 = vmatpush1.bf16.msra.mxu0 %v879_v12  ;;  %813 = vmatprep.subr.bf16.mxu1 %v894_v42 }
  0x42   : > { %400 = vmatprep.subr.bf16.mxu0 %v880_v13 }
  0x44   : > { %814 = vmatpush3.bf16.msra.mxu1 %v895_v43 }
  0x45   : > { %401 = vmatpush1.bf16.msra.mxu0 %v882_v14  ;;  %815 = vmatprep.subr.bf16.mxu1 %v896_v44 }
  0x46   : > { %402 = vmatprep.subr.bf16.mxu0 %v883_v15 }
  0x48   : > { %816 = vmatpush3.bf16.msra.mxu1 %v897_v45 }
  0x49   : > { %403 = vmatpush1.bf16.msra.mxu0 %v885_v16  ;;  %817 = vmatprep.subr.bf16.mxu1 %v898_v46  ;;  %v900_v16 = vld [vmem:[#allocation4 + $0x40] sm:$0xff]  }
  0x4c   : > { %421 = vmatmul.mubr.bf16.vlgmr.msra.gmra.mxu0 %v279_v18  ;;  %818 = vmatpush3.bf16.msra.mxu1 %v899_v47 }
  0x4d   : > { %819 = vmatprep.subr.bf16.mxu1 %v900_v16 }
  0x50   : > { %820 = vmatpush3.bf16.msra.mxu1 %v901_v17 }
 0x10c   : > { %v422_v26 = vpop.f32.mrf.mxu0 }
 0x10d   : > { %v1085_v27 = vadd.f32 %v422_v26, %v301_v24 }
 0x10e   : > { %v424_v28 = vpop.f32.mrf.mxu0 }
 0x10f   : > { %v1087_v29 = vadd.f32 %v424_v28, %v305_v25  ;;  %v429_v30 = vmul.f32 %v1085_v27, %v1085_v27 }
 0x110   : > { %v426_v31 = vpop.f32.mrf.mxu0 }
 0x111   : > { %431 = vrot.lane.b32.xlu0 %v429_v30, %s985_s22  ;;  %v435_v33 = vmul.f32 %v1087_v29, %v1087_v29 }
 0x112   : > { %v427_v32 = vpop.f32.mrf.mxu0 }
 0x115   : > { %438 = vrot.lane.b32.xlu0 %v435_v33, %s985_s22 }
 0x183   : > { %v432_v48 = vpop.permute.xlu0 %431 }
 0x184   : > { %v434_v49 = vadd.f32 %v432_v48, %v429_v30 }
 0x186   : > { %v436_v50 = vadd.f32 %v435_v33, %v434_v49 }
 0x187   : > { %v439_v51 = vpop.permute.xlu0 %438 }
 0x188   : > { %v441_v52 = vadd.f32 %v439_v51, %v436_v50 }
 0x18a   : > { %902 = vrsqrt.f32 %v441_v52  ;;  %vm444_vm0 = vcmp.eq.f32.partialorder %v441_v52, inf  ;;  %v447_v55 = vand.u32 2147483648, %v441_v52  ;;  %vm446_vm1 = vcmp.eq.f32.partialorder %v441_v52, 0.0 }
 0x197   : > { %v903_v53 = vpop.eup %902 }
 0x198   : > { %v443_v54 = vmul.f32 %v903_v53, %v441_v52 }
 0x19a   : > { %v445_v57 = vsel %vm444_vm0, %v441_v52, %v443_v54 }
 0x19b   : > { %v448_v58 = vsel %vm446_vm1, %v447_v55, %v445_v57 }
 0x19c   : > { %v456_v59 = vadd.f32 %v785_v56, %v448_v58  ;;  %v483_v10 = vadd.f32 1e-06, %v448_v58 }
 0x19e   : > { %v458_v60 = vmul.f32 0.70710677, %v456_v59  ;;  %v457_v21 = vmul.f32 0.5, %v456_v59 }
 0x1a0   : > { %v459_v61 = vand.u32 2147483647, %v458_v60  ;;  %vm478_vm2 = vcmp.ge.f32.partialorder %v458_v60, 0.0 }
 0x1a2   : > { %v460_v62 = vmul.f32 0.3275911, %v459_v61  ;;  %v472_v0 = vsub.f32 0.0, %v459_v61 }
 0x1a4   : > { %v461_v63 = vadd.f32 1.0, %v460_v62  ;;  %v473_v1 = vmul.f32 %v472_v0, %v459_v61 }
 0x1a6   : > { %904 = vrcp.f32 %v461_v63  ;;  %v474_v4 = vmul.f32 1.442695, %v473_v1 }
 0x1a8   : > { %906 = vpow2.f32 %v474_v4 }
 0x1a9   : > { %908 = vrcp.f32 %v483_v10 }
 0x1b3   : > { %v905_v2 = vpop.eup %904 }
 0x1b4   : > { %v463_v3 = vmul.f32 1.0614054, %v905_v2 }
 0x1b5   : > { %v907_v14 = vpop.eup %906 }
 0x1b6   : > { %v464_v5 = vadd.f32 -1.4531521, %v463_v3  ;;  %v909_v24 = vpop.eup %908 }
 0x1b8   : > { %v465_v6 = vmul.f32 %v905_v2, %v464_v5 }
 0x1ba   : > { %v466_v7 = vadd.f32 1.4214138, %v465_v6 }
 0x1bc   : > { %v467_v8 = vmul.f32 %v905_v2, %v466_v7 }
 0x1be   : > { %v468_v9 = vadd.f32 -0.28449672, %v467_v8 }
 0x1c0   : > { %v469_v11 = vmul.f32 %v905_v2, %v468_v9 }
 0x1c2   : > { %v470_v12 = vadd.f32 0.2548296, %v469_v11 }
 0x1c4   : > { %v471_v13 = vmul.f32 %v905_v2, %v470_v12 }
 0x1c6   : > { %v476_v15 = vmul.f32 %v907_v14, %v471_v13 }
 0x1c8   : > { %v477_v18 = vsub.f32 1.0, %v476_v15 }
 0x1ca   : > { %v479_v19 = vsub.f32 0.0, %v477_v18 }
 0x1cc   : > { %v480_v20 = vsel %vm478_vm2, %v477_v18, %v479_v19 }
 0x1cd   : > { %v481_v22 = vadd.f32 1.0, %v480_v20 }
 0x1cf   : > { %v482_v23 = vmul.f32 %v481_v22, %v457_v21 }
 0x1d1   : > { %v485_v25 = vmul.f32 %v909_v24, %v482_v23 }
 0x1d3   : > { %489 = vrot.lane.b32.xlu1 %v485_v25, %s985_s22  ;;  %v494_v26 = vmul.f32 %v485_v25, %v1087_v29  ;;  %v486_v28 = vmul.f32 %v485_v25, %v1085_v27 }
 0x1d5   : > { %v495_v35 = vpack.c.bf16 %v494_v26, %v494_v26  ;;  %v487_v36 = vpack.c.bf16 %v486_v28, %v486_v28 }
 0x245   : > { %v490_v30 = vpop.permute.xlu1 %489 }
 0x246   : > { %v492_v31 = vmul.f32 %v490_v30, %v1085_v27  ;;  %v496_v32 = vmul.f32 %v490_v30, %v1087_v29 }
 0x248   : > { %v493_v33 = vpack.c.bf16 %v492_v31, %v492_v31  ;;  %v497_v34 = vpack.c.bf16 %v496_v32, %v496_v32 }
 0x24a   : > { %v505_v37 = vsel %vm498_vm3, %v495_v35, %v497_v34  ;;  %v501_v38 = vsel %vm498_vm3, %v487_v36, %v493_v33 }
 0x24b   : > { %674 = vmatprep.mubr.bf16.mxu1 %v505_v37 }
 0x24c   : > { %675 = vmatmul.mubr.bf16.vlgmr.msra.gmra.mxu1 %v501_v38 }
 0x30c   : > { %v821_v39 = vpop.f32.mrf.mxu1 }
 0x30e   : > { %v822_v41 = vpop.f32.mrf.mxu1 }
 0x30f   : > { %v823_v42 = vadd.f32 %v822_v41, %v821_v39 }
 0x310   : > { %v824_v27 = vpop.f32.mrf.mxu1 }
 0x311   : > { %v677_v29 = vadd.f32 %v823_v42, %v786_v40 }
 0x312   : > { %v825_v43 = vpop.f32.mrf.mxu1 }
 0x313   : > { %682 = vst [vmem:[%s276_s30] sm:$0xff] %v677_v29 }
 0x314 PF: > { %s18_s21 = sadd.s32 1, %s976_s21  }
 0x315   : > { %p15_p3 = scmp.ge.s32.totalorder %s18_s21, 4  }
 0x317   :  { %17 = sbr.rel (!%p15_p3) target bundleno = 2 (0x2), region = 83 }
 0x31c   :  { %702 = vsyncpa [#allocation3], 1 }
 0x31d   :  { %704 = vsyncpa [#allocation3 + $0x1], 1 }
 0x31e   :  { %705 = vsyncpa [#allocation5], 1 }

</bundles_post_ra>
